<compile_context>
chip_gen: v7x
topology: tpu7x:2x2x1
jax: 0.10.0
libtpu: 0.0.40
codegen_flags: <defaults>
</compile_context>

<pallas_src>
import functools

import jax
import jax.numpy as jnp
from jax.experimental import pallas as pl
from jax.experimental.pallas import tpu as pltpu

_MiB = 1024 * 1024


def _round_up(x, m):
    return (x + m - 1) // m * m


def _graph_conv_kernel(a_ref, feat_k_ref, feat_row_ref, w_ref, bias_ref,
                       out_ref, agg_ref, *, fuse_cat):
    # a_ref:        (BT, TN, TK)   bf16  A row-tile x K-chunk
    # feat_k_ref:   (BT, TK, D)    bf16  feature K-chunk (RHS of A @ feat)
    # feat_row_ref: (BT, TN, D)    bf16  feature rows of this tile (left half of concat)
    # w_ref:        (2D, Fp)       bf16  fused weight [W1; W2], F padded to 128
    # bias_ref:     (1,  Fp)       f32
    # out_ref:      (BT, TN, Fp)   f32
    # agg_ref:      (BT, TN, D)    f32   scratch accumulator for the aggregation
    k = pl.program_id(2)

    @pl.when(k == 0)
    def _():
        agg_ref[...] = jnp.zeros_like(agg_ref)

    # Partial mean-aggregation: agg += A[:, rows, k-chunk] @ feat[k-chunk].
    agg_ref[...] += jnp.einsum(
        'bij,bjd->bid', a_ref[...], feat_k_ref[...],
        preferred_element_type=jnp.float32)

    @pl.when(k == pl.num_programs(2) - 1)
    def _():
        feat_row = feat_row_ref[...]                      # bf16 (BT, TN, D)
        bt, tn, d = feat_row.shape
        agg = agg_ref[...].astype(feat_row.dtype)         # bf16 for the MXU
        rows = bt * tn                                    # fill the MXU M dimension
        if fuse_cat:
            # D is a 128-multiple: lane-axis concat is layout-clean -> K = 2D.
            cat = jnp.concatenate([feat_row, agg], axis=-1)
            out = jnp.dot(cat.reshape(rows, 2 * d), w_ref[...],
                          preferred_element_type=jnp.float32)
        else:
            # D not a 128-multiple: avoid the lane relayout of the concat and
            # use two matmuls against static weight views instead.
            out = (jnp.dot(feat_row.reshape(rows, d), w_ref[:d, :],
                           preferred_element_type=jnp.float32)
                   + jnp.dot(agg.reshape(rows, d), w_ref[d:, :],
                             preferred_element_type=jnp.float32))
        out = jnp.maximum(out + bias_ref[...], 0.0)       # bias + ReLU in f32
        out_ref[...] = out.reshape(bt, tn, -1).astype(out_ref.dtype)


def _chip_config():
    """(vmem budget for blocks, vmem_limit_bytes or None, max TN)."""
    try:
        kind = jax.devices()[0].device_kind.lower()
    except Exception:  # pragma: no cover - defensive
        kind = ""
    if "v7" in kind:                      # 64 MiB VMEM / TC: tighter cap
        return 36 * _MiB, 48 * _MiB, 512
    if "v6" in kind or "trillium" in kind:  # 128 MiB VMEM: big tiles pay off
        return 48 * _MiB, 64 * _MiB, 512
    # v5e / unknown: stay inside the 16 MiB default scoped VMEM limit.
    return 12 * _MiB, None, 256


def graph_conv(features, A, weight, bias):
    """features: (B, N, D) f32, A: (B, N, N) row-normalized f32,
       weight: (2D, F) f32, bias: (F,) f32  ->  (B, N, F) f32."""
    B, N, D = features.shape
    F = weight.shape[1]
    assert weight.shape[0] == 2 * D
    assert A.shape == (B, N, N)

    budget, vmem_limit, tn_cap = _chip_config()

    # ---------------- tiling / padding decisions ----------------
    F_pad = _round_up(F, 128)                 # lane-dense output stores
    N128 = _round_up(N, 128)                  # lane-dense A tiles / MXU K

    def pow2_tile(cap):                       # largest {128,256,512,...} <= cap, N128
        t = 128
        while t * 2 <= min(cap, N128):
            t *= 2
        return t

    TN = pow2_tile(tn_cap)                    # A row-tile height
    TK = pow2_tile(512)                       # aggregation K-chunk

    def pick_bt(tn):                          # pack batches so M = BT*TN >= ~256
        want = max(1, 256 // tn)
        for cand in range(min(B, want), 0, -1):
            if B % cand == 0:
                return cand
        return 1

    BT = pick_bt(TN)

    def footprint(bt, tn, tk):                # double-buffered bytes per step
        blocks = (bt * tn * tk * 2            # A tile            (bf16)
                  + bt * tk * D * 2           # feature K-chunk   (bf16)
                  + bt * tn * D * 2           # feature row tile  (bf16)
                  + 2 * D * F_pad * 2         # fused weight      (bf16, resident)
                  + F_pad * 4                 # bias              (f32)
                  + bt * tn * F_pad * 4)      # output tile       (f32)
        return 2 * blocks + bt * tn * D * 4   # + f32 agg scratch (single buffer)

    while footprint(BT, TN, TK) > budget and TK > 128:
        TK //= 2
    while footprint(BT, TN, TK) > budget and TN > 128:
        TN //= 2
    while footprint(BT, TN, TK) > budget and BT > 1:
        nb = BT - 1
        while nb > 1 and B % nb:
            nb -= 1
        BT = nb
    # TODO(synk): very large D / F would additionally need K/F tiling of the
    # weight matmul (weight block is held resident here); not needed at module sizes.

    N_pad = _round_up(N, max(TN, TK))         # multiple of 128, TN and TK

    fp = footprint(BT, TN, TK)
    if vmem_limit is None and fp > 12 * _MiB:   # safety valve for odd shapes
        vmem_limit = min(int(1.5 * fp) + 8 * _MiB, 96 * _MiB)

    # ---------------- cast to bf16 + zero-pad operands ----------------
    feat_bf = features.astype(jnp.bfloat16)
    A_bf = A.astype(jnp.bfloat16)
    w_bf = weight.astype(jnp.bfloat16)
    bias_f = bias
    if N_pad != N:
        feat_bf = jnp.pad(feat_bf, ((0, 0), (0, N_pad - N), (0, 0)))
        A_bf = jnp.pad(A_bf, ((0, 0), (0, N_pad - N), (0, N_pad - N)))
        # TODO(synk): for very large ragged N, mask the last row tile in-kernel
        # instead of materializing a padded copy of A.
    if F_pad != F:
        w_bf = jnp.pad(w_bf, ((0, 0), (0, F_pad - F)))
        bias_f = jnp.pad(bias_f, (0, F_pad - F))
    bias_f = bias_f.reshape(1, F_pad).astype(jnp.float32)

    grid = (B // BT, N_pad // TN, N_pad // TK)   # b leading: v7x 2-TC split on batch
    kernel = functools.partial(_graph_conv_kernel, fuse_cat=(D % 128 == 0))

    grid_spec = pltpu.PrefetchScalarGridSpec(
        num_scalar_prefetch=0,
        grid=grid,
        in_specs=[
            pl.BlockSpec((BT, TN, TK), lambda b, i, k: (b, i, k)),   # A row x K tile
            pl.BlockSpec((BT, TK, D), lambda b, i, k: (b, k, 0)),    # feature K-chunk
            pl.BlockSpec((BT, TN, D), lambda b, i, k: (b, i, 0)),    # feature row tile
            pl.BlockSpec((2 * D, F_pad), lambda b, i, k: (0, 0)),    # fused weight
            pl.BlockSpec((1, F_pad), lambda b, i, k: (0, 0)),        # bias
        ],
        out_specs=pl.BlockSpec((BT, TN, F_pad), lambda b, i, k: (b, i, 0)),
        scratch_shapes=[pltpu.VMEM((BT, TN, D), jnp.float32)],
    )

    cp_kwargs = dict(dimension_semantics=("parallel", "parallel", "arbitrary"))
    if vmem_limit is not None:
        cp_kwargs["vmem_limit_bytes"] = int(vmem_limit)

    out = pl.pallas_call(
        kernel,
        out_shape=jax.ShapeDtypeStruct((B, N_pad, F_pad), features.dtype),
        grid_spec=grid_spec,
        compiler_params=pltpu.CompilerParams(**cp_kwargs),
    )(A_bf, feat_bf, feat_bf, w_bf, bias_f)

    if N_pad != N or F_pad != F:
        out = out[:, :N, :F]
    return out


def _reference(features, A, weight, bias):
    agg = jnp.einsum('bij,bjd->bid', A, features)
    cat = jnp.concatenate([features, agg], axis=2)
    out = jnp.einsum('bnd,df->bnf', cat, weight) + bias
    return jnp.maximum(out, 0.0)


if __name__ == "__main__":
    key = jax.random.PRNGKey(0)
    B, N, D, F = 2, 16, 32, 64   # batch, nodes, in_dim, out_dim

    k_feat, k_adj, k_w = jax.random.split(key, 3)
    features = jax.random.normal(k_feat, (B, N, D), dtype=jnp.float32)

    # Row-normalized adjacency (what a MeanAggregator expects).
    adj_raw = (jax.random.uniform(k_adj, (B, N, N)) > 0.5).astype(jnp.float32)
    adj_raw = adj_raw + jnp.eye(N)[None]          # self loops, avoid zero rows
    A = adj_raw / jnp.sum(adj_raw, axis=-1, keepdims=True)

    # Deterministic xavier_uniform_ for weight, zeros for bias (as in __init__).
    fan_in, fan_out = 2 * D, F
    bound = jnp.sqrt(6.0 / (fan_in + fan_out))
    weight = jax.random.uniform(k_w, (2 * D, F), minval=-bound, maxval=bound,
                                dtype=jnp.float32)
    bias = jnp.zeros((F,), dtype=jnp.float32)

    out = graph_conv(features, A, weight, bias)
    out = jax.block_until_ready(out)

    ref = _reference(features, A, weight, bias)
    assert out.shape == (B, N, F)
    # bf16 inputs with f32 accumulation: loosened tolerance vs. the f32 reference.
    max_err = jnp.max(jnp.abs(out - ref))
    assert jnp.allclose(out, ref, atol=6e-2, rtol=3e-2), \
        f"mismatch vs reference (max abs err {max_err})"

    print("KERNEL_OK")
</pallas_src>

<mosaic_0001>
module attributes {stable_mosaic.version = 11 : i64} {
  func.func @_graph_conv_kernel(%arg0: i32, %arg1: i32, %arg2: i32, %arg3: memref<2x128x128xbf16, #tpu.memory_space<vmem>>, %arg4: memref<2x128x32xbf16, #tpu.memory_space<vmem>>, %arg5: memref<2x128x32xbf16, #tpu.memory_space<vmem>>, %arg6: memref<64x128xbf16, #tpu.memory_space<vmem>>, %arg7: memref<1x128xf32, #tpu.memory_space<vmem>>, %arg8: memref<2x128x128xf32, #tpu.memory_space<vmem>>, %arg9: memref<2x128x32xf32, #tpu.memory_space<vmem>>) attributes {dimension_semantics = [#tpu.dimension_semantics<parallel>, #tpu.dimension_semantics<parallel>, #tpu.dimension_semantics<arbitrary>], iteration_bounds = array<i64: 1, 1, 1>, scalar_prefetch = 0 : i64, scratch_operands = 1 : i64, tpu.core_type = #tpu.core_type<tc>, window_params = [{transform_indices = @transform_0, window_bounds = array<i64: 2, 128, 128>}, {transform_indices = @transform_1, window_bounds = array<i64: 2, 128, 32>}, {transform_indices = @transform_2, window_bounds = array<i64: 2, 128, 32>}, {pipeline_mode = #tpu.pipeline_mode<synchronous>, transform_indices = @transform_3, window_bounds = array<i64: 64, 128>}, {pipeline_mode = #tpu.pipeline_mode<synchronous>, transform_indices = @transform_4, window_bounds = array<i64: 1, 128>}, {transform_indices = @transform_5, window_bounds = array<i64: 2, 128, 128>}]} {
    %c0_i32 = arith.constant 0 : i32
    %0 = arith.cmpi eq, %arg2, %c0_i32 : i32
    %1 = arith.extui %0 : i1 to i32
    %c0_i32_0 = arith.constant 0 : i32
    %2 = arith.cmpi ne, %1, %c0_i32_0 : i32
    scf.if %2 {
      %cst_14 = arith.constant 0.000000e+00 : f32
      %12 = vector.broadcast %cst_14 : f32 to vector<2x128x32xf32>
      %c0_15 = arith.constant 0 : index
      %c0_16 = arith.constant 0 : index
      %c0_17 = arith.constant 0 : index
      %13 = vector.load %arg9[%c0_15, %c0_16, %c0_17] : memref<2x128x32xf32, #tpu.memory_space<vmem>>, vector<2x128x32xf32>
      tpu.vector_store %arg9[%c0_15, %c0_16, %c0_17], %12 {strides = array<i32>} : memref<2x128x32xf32, #tpu.memory_space<vmem>>, vector<2x128x32xf32>,
    } else {
    }
    %c0 = arith.constant 0 : index
    %c0_1 = arith.constant 0 : index
    %c0_2 = arith.constant 0 : index
    %3 = vector.load %arg9[%c0, %c0_1, %c0_2] : memref<2x128x32xf32, #tpu.memory_space<vmem>>, vector<2x128x32xf32>
    %c0_3 = arith.constant 0 : index
    %c0_4 = arith.constant 0 : index
    %c0_5 = arith.constant 0 : index
    %4 = vector.load %arg3[%c0_3, %c0_4, %c0_5] : memref<2x128x128xbf16, #tpu.memory_space<vmem>>, vector<2x128x128xbf16>
    %c0_6 = arith.constant 0 : index
    %c0_7 = arith.constant 0 : index
    %c0_8 = arith.constant 0 : index
    %5 = vector.load %arg4[%c0_6, %c0_7, %c0_8] : memref<2x128x32xbf16, #tpu.memory_space<vmem>>, vector<2x128x32xbf16>
    "tpu.trace_start"() <{level = 10 : i32, message = "bij,bjd->bid"}> : () -> ()
    %cst = arith.constant dense<0.000000e+00> : vector<2x128x32xf32>
    %6 = tpu.matmul %4, %5, %cst {dimension_numbers = #tpu.dot_dimension_numbers<[2], [1], [1], [2], [0, 0, 0, 1, 1, 2], [0], [0]>} : vector<2x128x128xbf16>, vector<2x128x32xbf16>, vector<2x128x32xf32> -> vector<2x128x32xf32>
    "tpu.trace_stop"() : () -> ()
    %7 = arith.addf %3, %6 : vector<2x128x32xf32>
    %c0_9 = arith.constant 0 : index
    %c0_10 = arith.constant 0 : index
    %c0_11 = arith.constant 0 : index
    %8 = vector.load %arg9[%c0_9, %c0_10, %c0_11] : memref<2x128x32xf32, #tpu.memory_space<vmem>>, vector<2x128x32xf32>
    tpu.vector_store %arg9[%c0_9, %c0_10, %c0_11], %7 {strides = array<i32>} : memref<2x128x32xf32, #tpu.memory_space<vmem>>, vector<2x128x32xf32>,
    %c0_i32_12 = arith.constant 0 : i32
    %9 = arith.cmpi eq, %arg2, %c0_i32_12 : i32
    %10 = arith.extui %9 : i1 to i32
    %c0_i32_13 = arith.constant 0 : i32
    %11 = arith.cmpi ne, %10, %c0_i32_13 : i32
    scf.if %11 {
      %c0_14 = arith.constant 0 : index
      %c0_15 = arith.constant 0 : index
      %c0_16 = arith.constant 0 : index
      %12 = vector.load %arg5[%c0_14, %c0_15, %c0_16] : memref<2x128x32xbf16, #tpu.memory_space<vmem>>, vector<2x128x32xbf16>
      %c0_17 = arith.constant 0 : index
      %c0_18 = arith.constant 0 : index
      %c0_19 = arith.constant 0 : index
      %13 = vector.load %arg9[%c0_17, %c0_18, %c0_19] : memref<2x128x32xf32, #tpu.memory_space<vmem>>, vector<2x128x32xf32>
      %14 = arith.truncf %13 : vector<2x128x32xf32> to vector<2x128x32xbf16>
      %15 = vector.shape_cast %12 : vector<2x128x32xbf16> to vector<256x32xbf16>
      %c0_20 = arith.constant 0 : index
      %c0_21 = arith.constant 0 : index
      %16 = vector.load %arg6[%c0_20, %c0_21] : memref<64x128xbf16, #tpu.memory_space<vmem>>, vector<32x128xbf16>
      %cst_22 = arith.constant dense<0.000000e+00> : vector<256x128xf32>
      %17 = tpu.matmul %15, %16, %cst_22 {dimension_numbers = #tpu.dot_dimension_numbers<[1], [0], [0], [1], [0, 0, 1, 1], [], []>} : vector<256x32xbf16>, vector<32x128xbf16>, vector<256x128xf32> -> vector<256x128xf32>
      %18 = vector.shape_cast %14 : vector<2x128x32xbf16> to vector<256x32xbf16>
      %c32 = arith.constant 32 : index
      %c0_23 = arith.constant 0 : index
      %19 = vector.load %arg6[%c32, %c0_23] : memref<64x128xbf16, #tpu.memory_space<vmem>>, vector<32x128xbf16>
      %cst_24 = arith.constant dense<0.000000e+00> : vector<256x128xf32>
      %20 = tpu.matmul %18, %19, %cst_24 {dimension_numbers = #tpu.dot_dimension_numbers<[1], [0], [0], [1], [0, 0, 1, 1], [], []>} : vector<256x32xbf16>, vector<32x128xbf16>, vector<256x128xf32> -> vector<256x128xf32>
      %21 = arith.addf %17, %20 : vector<256x128xf32>
      %c0_25 = arith.constant 0 : index
      %c0_26 = arith.constant 0 : index
      %22 = vector.load %arg7[%c0_25, %c0_26] : memref<1x128xf32, #tpu.memory_space<vmem>>, vector<1x128xf32>
      %23 = vector.broadcast %22 : vector<1x128xf32> to vector<256x128xf32>
      %24 = arith.addf %21, %23 : vector<256x128xf32>
      %cst_27 = arith.constant 0.000000e+00 : f32
      %25 = vector.broadcast %cst_27 : f32 to vector<256x128xf32>
      %26 = arith.maximumf %24, %25 : vector<256x128xf32>
      %27 = vector.shape_cast %26 : vector<256x128xf32> to vector<2x128x128xf32>
      %c0_28 = arith.constant 0 : index
      %c0_29 = arith.constant 0 : index
      %c0_30 = arith.constant 0 : index
      %28 = vector.load %arg8[%c0_28, %c0_29, %c0_30] : memref<2x128x128xf32, #tpu.memory_space<vmem>>, vector<2x128x128xf32>
      tpu.vector_store %arg8[%c0_28, %c0_29, %c0_30], %27 {strides = array<i32>} : memref<2x128x128xf32, #tpu.memory_space<vmem>>, vector<2x128x128xf32>,
    } else {
    }
    return
  }
  func.func @transform_0(%arg0: i32, %arg1: i32, %arg2: i32) -> (i32, i32, i32) {
    %c0_i32 = arith.constant 0 : i32
    return %arg0, %arg1, %arg2 : i32, i32, i32
  }
  func.func @transform_1(%arg0: i32, %arg1: i32, %arg2: i32) -> (i32, i32, i32) {
    %c0_i32 = arith.constant 0 : i32
    %c0_i32_0 = arith.constant 0 : i32
    return %arg0, %arg2, %c0_i32 : i32, i32, i32
  }
  func.func @transform_2(%arg0: i32, %arg1: i32, %arg2: i32) -> (i32, i32, i32) {
    %c0_i32 = arith.constant 0 : i32
    %c0_i32_0 = arith.constant 0 : i32
    return %arg0, %arg1, %c0_i32 : i32, i32, i32
  }
  func.func @transform_3(%arg0: i32, %arg1: i32, %arg2: i32) -> (i32, i32) {
    %c0_i32 = arith.constant 0 : i32
    %c0_i32_0 = arith.constant 0 : i32
    %c0_i32_1 = arith.constant 0 : i32
    return %c0_i32, %c0_i32_0 : i32, i32
  }
  func.func @transform_4(%arg0: i32, %arg1: i32, %arg2: i32) -> (i32, i32) {
    %c0_i32 = arith.constant 0 : i32
    %c0_i32_0 = arith.constant 0 : i32
    %c0_i32_1 = arith.constant 0 : i32
    return %c0_i32, %c0_i32_0 : i32, i32
  }
  func.func @transform_5(%arg0: i32, %arg1: i32, %arg2: i32) -> (i32, i32, i32) {
    %c0_i32 = arith.constant 0 : i32
    %c0_i32_0 = arith.constant 0 : i32
    return %arg0, %arg1, %c0_i32 : i32, i32, i32
  }
}

</mosaic_0001>

<bundles_post_ra>
// kernel: tpu_custom_call.1
= control target key start
LH: loop header
LB: loop body
LE: loop exit
PB: predicated region body
PF: predicated region fallthrough
CT: control target
= control target key end

     0   :  { %vm26_vm0 = vcmask 261120   ;;  %v1739_v2 = vmov 0.0   ;;  %s2146_s0 = inlined_call_operand.vmem [shape: bf16[2,128,128], index: 0, kind: input, shape index: {}]   ;;  %s2147_s1 = inlined_call_operand.vmem [shape: bf16[2,128,32], index: 1, kind: input, shape index: {}]   ;;  %s2148_s2 = inlined_call_operand.vmem [shape: bf16[2,128,32], index: 2, kind: input, shape index: {}]   ;;  %s2149_s3 = inlined_call_operand.vmem [shape: bf16[64,128], index: 3, kind: input, shape index: {}]   ;;  %s2150_s4 = inlined_call_operand.vmem [shape: f32[1,128], index: 4, kind: input, shape index: {}]   ;;  %s2151_s5 = inlined_call_operand.hbm [shape: f32[2,128,128], index: 5, kind: output, shape index: {}]  }
   0x1   :  { %v1663_v0 = vld [vmem:[%s2147_s1] sm:$0xff]   ;;  %v1664_v1 = vld [vmem:[%s2147_s1 + $0x8] sm:$0xff]   ;;  %29 = vst.msk [vmem:[#allocation2 + $0x10] sm:$0xff] %vm26_vm0, %v1739_v2  ;;  %27 = vst.msk [vmem:[#allocation2] sm:$0xff] %vm26_vm0, %v1739_v2 }
   0x2   :  { %1491 = vmatprep.subr.bf16.mxu0 %v1663_v0  ;;  %28 = vst.msk [vmem:[#allocation2 + $0x8] sm:$0xff] %vm26_vm0, %v1739_v2  ;;  %30 = vst.msk [vmem:[#allocation2 + $0x18] sm:$0xff] %vm26_vm0, %v1739_v2  ;;  %v1665_v3 = vld [vmem:[%s2147_s1 + $0x10] sm:$0xff]   ;;  %v1666_v4 = vld [vmem:[%s2147_s1 + $0x18] sm:$0xff]  }
   0x3   :  { %31 = vst.msk [vmem:[#allocation2 + $0x20] sm:$0xff] %vm26_vm0, %v1739_v2  ;;  %32 = vst.msk [vmem:[#allocation2 + $0x28] sm:$0xff] %vm26_vm0, %v1739_v2  ;;  %1492 = vmatpush3.bf16.msra.mxu0 %v1663_v0  ;;  %v1671_v5 = vld [vmem:[%s2147_s1 + $0x40] sm:$0xff]   ;;  %v1674_v8 = vld [vmem:[%s2147_s1 + $0x48] sm:$0xff]  }
   0x4   :  { %33 = vst.msk [vmem:[#allocation2 + $0x30] sm:$0xff] %vm26_vm0, %v1739_v2  ;;  %34 = vst.msk [vmem:[#allocation2 + $0x38] sm:$0xff] %vm26_vm0, %v1739_v2  ;;  %1493 = vmatprep.subr.bf16.mxu0 %v1664_v1  ;;  %v1672_v6 = vld [vmem:[%s2146_s0] sm:$0xff]   ;;  %1523 = vmatprep.subr.bf16.mxu1 %v1671_v5  ;;  %v1675_v9 = vld [vmem:[%s2147_s1 + $0x50] sm:$0xff]  }
   0x5   :  { %35 = vst.msk [vmem:[#allocation2 + $0x40] sm:$0xff] %vm26_vm0, %v1739_v2  ;;  %36 = vst.msk [vmem:[#allocation2 + $0x48] sm:$0xff] %vm26_vm0, %v1739_v2  ;;  %v1667_v7 = vld [vmem:[%s2147_s1 + $0x20] sm:$0xff]   ;;  %1524 = vmatpush3.bf16.msra.mxu1 %v1671_v5  ;;  %1507 = vmatprep.mubr.bf16.mxu0 %v1672_v6  ;;  %v1668_v10 = vld [vmem:[%s2147_s1 + $0x28] sm:$0xff]  }
   0x6   :  { %37 = vst.msk [vmem:[#allocation2 + $0x50] sm:$0xff] %vm26_vm0, %v1739_v2  ;;  %38 = vst.msk [vmem:[#allocation2 + $0x58] sm:$0xff] %vm26_vm0, %v1739_v2  ;;  %1525 = vmatprep.subr.bf16.mxu1 %v1674_v8  ;;  %v1678_v11 = vld [vmem:[%s2147_s1 + $0x58] sm:$0xff]   ;;  %v1669_v12 = vld [vmem:[%s2147_s1 + $0x30] sm:$0xff]  }
   0x7   :  { %39 = vst.msk [vmem:[#allocation2 + $0x60] sm:$0xff] %vm26_vm0, %v1739_v2  ;;  %40 = vst.msk [vmem:[#allocation2 + $0x68] sm:$0xff] %vm26_vm0, %v1739_v2  ;;  %1494 = vmatpush3.bf16.msra.mxu0 %v1664_v1  ;;  %v1679_v13 = vld [vmem:[%s2147_s1 + $0x60] sm:$0xff]   ;;  %v1670_v14 = vld [vmem:[%s2147_s1 + $0x38] sm:$0xff]  }
   0x8   :  { %41 = vst.msk [vmem:[#allocation2 + $0x70] sm:$0xff] %vm26_vm0, %v1739_v2  ;;  %42 = vst.msk [vmem:[#allocation2 + $0x78] sm:$0xff] %vm26_vm0, %v1739_v2  ;;  %1495 = vmatprep.subr.bf16.mxu0 %v1665_v3  ;;  %v1682_v15 = vld [vmem:[%s2147_s1 + $0x68] sm:$0xff]   ;;  %v1687_v16 = vld [vmem:[%s2146_s0 + $0x40] sm:$0xff]  }
   0x9   :  { %43 = vst.msk [vmem:[#allocation2 + $0x80] sm:$0xff] %vm26_vm0, %v1739_v2  ;;  %44 = vst.msk [vmem:[#allocation2 + $0x88] sm:$0xff] %vm26_vm0, %v1739_v2  ;;  %1526 = vmatpush3.bf16.msra.mxu1 %v1674_v8  ;;  %1539 = vmatprep.mubr.bf16.mxu1 %v1687_v16  ;;  %v1683_v17 = vld [vmem:[%s2147_s1 + $0x70] sm:$0xff]   ;;  %v1673_v18 = vld [vmem:[%s2146_s0 + $0x8] sm:$0xff]  }
   0xa   :  { %45 = vst.msk [vmem:[#allocation2 + $0x90] sm:$0xff] %vm26_vm0, %v1739_v2  ;;  %46 = vst.msk [vmem:[#allocation2 + $0x98] sm:$0xff] %vm26_vm0, %v1739_v2  ;;  %1527 = vmatprep.subr.bf16.mxu1 %v1675_v9  ;;  %v1676_v19 = vld [vmem:[%s2146_s0 + $0x10] sm:$0xff]   ;;  %v1686_v20 = vld [vmem:[%s2147_s1 + $0x78] sm:$0xff]  }
   0xb   :  { %47 = vst.msk [vmem:[#allocation2 + $0xa0] sm:$0xff] %vm26_vm0, %v1739_v2  ;;  %48 = vst.msk [vmem:[#allocation2 + $0xa8] sm:$0xff] %vm26_vm0, %v1739_v2  ;;  %1496 = vmatpush3.bf16.msra.mxu0 %v1665_v3  ;;  %v1696_v21 = vld [vmem:[%s2149_s3] sm:$0xff]   ;;  %v1695_v22 = vld [vmem:[%s2149_s3 + $0x10] sm:$0xff]  }
   0xc   :  { %49 = vst.msk [vmem:[#allocation2 + $0xb0] sm:$0xff] %vm26_vm0, %v1739_v2  ;;  %50 = vst.msk [vmem:[#allocation2 + $0xb8] sm:$0xff] %vm26_vm0, %v1739_v2  ;;  %1497 = vmatprep.subr.bf16.mxu0 %v1666_v4  ;;  %v1677_v23 = vld [vmem:[%s2146_s0 + $0x18] sm:$0xff]   ;;  %v1688_v24 = vld [vmem:[%s2146_s0 + $0x48] sm:$0xff]  }
   0xd   :  { %51 = vst.msk [vmem:[#allocation2 + $0xc0] sm:$0xff] %vm26_vm0, %v1739_v2  ;;  %52 = vst.msk [vmem:[#allocation2 + $0xc8] sm:$0xff] %vm26_vm0, %v1739_v2  ;;  %1528 = vmatpush3.bf16.msra.mxu1 %v1675_v9  ;;  %v1680_v25 = vld [vmem:[%s2146_s0 + $0x20] sm:$0xff]   ;;  %v1689_v26 = vld [vmem:[%s2146_s0 + $0x50] sm:$0xff]  }
   0xe   :  { %53 = vst.msk [vmem:[#allocation2 + $0xd0] sm:$0xff] %vm26_vm0, %v1739_v2  ;;  %54 = vst.msk [vmem:[#allocation2 + $0xd8] sm:$0xff] %vm26_vm0, %v1739_v2  ;;  %1529 = vmatprep.subr.bf16.mxu1 %v1678_v11  ;;  %v1681_v27 = vld [vmem:[%s2146_s0 + $0x28] sm:$0xff]   ;;  %v1690_v28 = vld [vmem:[%s2146_s0 + $0x58] sm:$0xff]  }
   0xf   :  { %55 = vst.msk [vmem:[#allocation2 + $0xe0] sm:$0xff] %vm26_vm0, %v1739_v2  ;;  %56 = vst.msk [vmem:[#allocation2 + $0xe8] sm:$0xff] %vm26_vm0, %v1739_v2  ;;  %1498 = vmatpush3.bf16.msra.mxu0 %v1666_v4 }
  0x10   :  { %57 = vst.msk [vmem:[#allocation2 + $0xf0] sm:$0xff] %vm26_vm0, %v1739_v2  ;;  %58 = vst.msk [vmem:[#allocation2 + $0xf8] sm:$0xff] %vm26_vm0, %v1739_v2  ;;  %1499 = vmatprep.subr.bf16.mxu0 %v1667_v7 }
  0x11   :  { %1530 = vmatpush3.bf16.msra.mxu1 %v1678_v11 }
  0x12   :  { %1531 = vmatprep.subr.bf16.mxu1 %v1679_v13 }
  0x13   :  { %1500 = vmatpush3.bf16.msra.mxu0 %v1667_v7 }
  0x14   :  { %1501 = vmatprep.subr.bf16.mxu0 %v1668_v10 }
  0x15   :  { %1532 = vmatpush3.bf16.msra.mxu1 %v1679_v13 }
  0x16   :  { %1533 = vmatprep.subr.bf16.mxu1 %v1682_v15 }
  0x17   :  { %1502 = vmatpush3.bf16.msra.mxu0 %v1668_v10 }
  0x18   :  { %1503 = vmatprep.subr.bf16.mxu0 %v1669_v12 }
  0x19   :  { %1534 = vmatpush3.bf16.msra.mxu1 %v1682_v15 }
  0x1a   :  { %1535 = vmatprep.subr.bf16.mxu1 %v1683_v17 }
  0x1b   :  { %1504 = vmatpush3.bf16.msra.mxu0 %v1669_v12 }
  0x1c   :  { %1505 = vmatprep.subr.bf16.mxu0 %v1670_v14 }
  0x1d   :  { %1536 = vmatpush3.bf16.msra.mxu1 %v1683_v17 }
  0x1e   :  { %1537 = vmatprep.subr.bf16.mxu1 %v1686_v20 }
  0x1f   :  { %1506 = vmatpush3.bf16.msra.mxu0 %v1670_v14 }
  0x20   :  { %1591 = vmatprep.subr.bf16.mxu0 %v1696_v21 }
  0x21   :  { %1538 = vmatpush3.bf16.msra.mxu1 %v1686_v20 }
  0x22   :  { %1508 = vmatmul.mubr.bf16.vlgmr.msra.gmra.mrb[0].mxu0 %v1673_v18  ;;  %1555 = vmatprep.subr.bf16.mxu1 %v1695_v22 }
  0x23   :  { %1511 = vmatprep.mubr.bf16.mxu0 %v1676_v19  ;;  %1592 = vmatpush3.bf16.msra.mxu0 %v1696_v21 }
  0x24   :  { %1540 = vmatmul.mubr.bf16.vlgmr.msra.gmra.mrb[0].mxu1 %v1688_v24 }
  0x25   :  { %1543 = vmatprep.mubr.bf16.mxu1 %v1689_v26  ;;  %1556 = vmatpush3.bf16.msra.mxu1 %v1695_v22 }
  0x2a   :  { %1512 = vmatmul.mubr.bf16.gmra.mrb[4].mxu0 %v1677_v23 }
  0x2b   :  { %1515 = vmatprep.mubr.bf16.mxu0 %v1680_v25 }
  0x2c   :  { %10 = vsyncpa [#allocation4], 0  ;;  %v1684_v29 = vld [vmem:[%s2146_s0 + $0x30] sm:$0xff]   ;;  %v1691_v30 = vld [vmem:[%s2146_s0 + $0x60] sm:$0xff]   ;;  %1544 = vmatmul.mubr.bf16.gmra.mrb[4].mxu1 %v1690_v28 }
  0x2d   :  { %1547 = vmatprep.mubr.bf16.mxu1 %v1691_v30  ;;  %v1685_v31 = vld [vmem:[%s2146_s0 + $0x38] sm:$0xff]   ;;  %v1692_v32 = vld [vmem:[%s2146_s0 + $0x68] sm:$0xff]   ;;  %v1693_v33 = vld [vmem:[%s2146_s0 + $0x70] sm:$0xff]  }
  0x2e   :  { %v1694_v34 = vld [vmem:[%s2146_s0 + $0x78] sm:$0xff]   ;;  %v1698_v36 = vld [vmem:[%s2149_s3 + $0x8] sm:$0xff]   ;;  %v1699_v37 = vld [vmem:[%s2148_s2] sm:$0xff]  }
  0x2f   :  { %v1697_v35 = vld [vmem:[%s2149_s3 + $0x18] sm:$0xff]   ;;  %1593 = vmatprep.subr.bf16.mxu0 %v1698_v36  ;;  %v1700_v38 = vld [vmem:[%s2148_s2 + $0x8] sm:$0xff]   ;;  %v1701_v39 = vld [vmem:[%s2148_s2 + $0x10] sm:$0xff]  }
  0x30   :  { %1557 = vmatprep.subr.bf16.mxu1 %v1697_v35  ;;  %1594 = vmatpush3.bf16.msra.mxu0 %v1698_v36  ;;  %v1702_v40 = vld [vmem:[%s2148_s2 + $0x18] sm:$0xff]   ;;  %v1703_v41 = vld [vmem:[%s2148_s2 + $0x20] sm:$0xff]   ;;  %v1704_v42 = vld [vmem:[%s2148_s2 + $0x28] sm:$0xff]  }
  0x31   :  { %1558 = vmatpush3.bf16.msra.mxu1 %v1697_v35  ;;  %v1705_v43 = vld [vmem:[%s2148_s2 + $0x30] sm:$0xff]   ;;  %v1706_v44 = vld [vmem:[%s2148_s2 + $0x38] sm:$0xff]   ;;  %v1707_v45 = vld [vmem:[%s2148_s2 + $0x40] sm:$0xff]  }
  0x32   :  { %1516 = vmatmul.mubr.bf16.gmra.mrb[8].mxu0 %v1681_v27  ;;  %v1708_v46 = vld [vmem:[%s2148_s2 + $0x48] sm:$0xff]   ;;  %v1709_v47 = vld [vmem:[%s2148_s2 + $0x50] sm:$0xff]   ;;  %v1710_v48 = vld [vmem:[%s2148_s2 + $0x58] sm:$0xff]  }
  0x33   :  { %1519 = vmatprep.mubr.bf16.mxu0 %v1684_v29  ;;  %v1711_v49 = vld [vmem:[%s2148_s2 + $0x60] sm:$0xff]   ;;  %v1712_v50 = vld [vmem:[%s2148_s2 + $0x68] sm:$0xff]   ;;  %v1713_v51 = vld [vmem:[%s2148_s2 + $0x70] sm:$0xff]  }
  0x34   :  { %1548 = vmatmul.mubr.bf16.gmra.mrb[8].mxu1 %v1692_v32  ;;  %v1714_v52 = vld [vmem:[%s2148_s2 + $0x78] sm:$0xff]   ;;  %v61_v53 = vld [vmem:[#allocation2 + $0x10] sm:$0xff]  ;;  %v59_v54 = vld [vmem:[#allocation2] sm:$0xff] }
  0x35   :  { %1551 = vmatprep.mubr.bf16.mxu1 %v1693_v33  ;;  %v62_v56 = vld [vmem:[#allocation2 + $0x18] sm:$0xff]  ;;  %v60_v59 = vld [vmem:[#allocation2 + $0x8] sm:$0xff]  ;;  %v65_v1 = vld [vmem:[#allocation2 + $0x30] sm:$0xff] }
  0x36   :  { %v77_v2 = vld [vmem:[#allocation2 + $0x90] sm:$0xff]  ;;  %v63_v3 = vld [vmem:[#allocation2 + $0x20] sm:$0xff]  ;;  %v66_v6 = vld [vmem:[#allocation2 + $0x38] sm:$0xff] }
  0x37   :  { %v75_v4 = vld [vmem:[#allocation2 + $0x80] sm:$0xff]  ;;  %v78_v8 = vld [vmem:[#allocation2 + $0x98] sm:$0xff]  ;;  %v64_v11 = vld [vmem:[#allocation2 + $0x28] sm:$0xff] }
  0x38   :  { %v76_v14 = vld [vmem:[#allocation2 + $0x88] sm:$0xff]  ;;  %v69_v28 = vld [vmem:[#allocation2 + $0x50] sm:$0xff]  ;;  %v67_v32 = vld [vmem:[#allocation2 + $0x40] sm:$0xff] }
  0x39   :  { %v70_v36 = vld [vmem:[#allocation2 + $0x58] sm:$0xff] }
  0x3a   :  { %1520 = vmatmul.mubr.bf16.gmra.mrb[12].mxu0 %v1685_v31  ;;  %v81_v31 = vld [vmem:[#allocation2 + $0xb0] sm:$0xff] }
  0x3b   :  { %1595 = vmatprep.mubr.msk.bf16.mxu0 %vm26_vm0, %v1699_v37 }
  0x3c   :  { %1552 = vmatmul.mubr.bf16.gmra.mrb[12].mxu1 %v1694_v34  ;;  %v79_v34 = vld [vmem:[#allocation2 + $0xa0] sm:$0xff] }
  0x42   :  { %1596 = vmatmul.mubr.msk.bf16.vlgmr.msra.gmra.mrb[16].mxu0 %vm26_vm0, %v1700_v38  ;;  %v82_v38 = vld [vmem:[#allocation2 + $0xb8] sm:$0xff] }
  0x43   :  { %1599 = vmatprep.mubr.msk.bf16.mxu0 %vm26_vm0, %v1701_v39 }
  0x4a   :  { %1600 = vmatmul.mubr.msk.bf16.gmra.mrb[20].mxu0 %vm26_vm0, %v1702_v40 }
  0x4b   :  { %1603 = vmatprep.mubr.msk.bf16.mxu0 %vm26_vm0, %v1703_v41  ;;  %v68_v41 = vld [vmem:[#allocation2 + $0x48] sm:$0xff] }
  0x52   :  { %1604 = vmatmul.mubr.msk.bf16.gmra.mrb[24].mxu0 %vm26_vm0, %v1704_v42 }
  0x53   :  { %1607 = vmatprep.mubr.msk.bf16.mxu0 %vm26_vm0, %v1705_v43 }
  0x5a   :  { %1608 = vmatmul.mubr.msk.bf16.gmra.mrb[28].mxu0 %vm26_vm0, %v1706_v44  ;;  %v80_v44 = vld [vmem:[#allocation2 + $0xa8] sm:$0xff] }
  0x5b   :  { %1611 = vmatprep.mubr.msk.bf16.mxu0 %vm26_vm0, %v1707_v45 }
  0x62   :  { %1612 = vmatmul.mubr.msk.bf16.gmra.mrb[32].mxu0 %vm26_vm0, %v1708_v46 }
  0x63   :  { %1615 = vmatprep.mubr.msk.bf16.mxu0 %vm26_vm0, %v1709_v47 }
  0x6a   :  { %1616 = vmatmul.mubr.msk.bf16.gmra.mrb[36].mxu0 %vm26_vm0, %v1710_v48 }
  0x6b   :  { %1619 = vmatprep.mubr.msk.bf16.mxu0 %vm26_vm0, %v1711_v49 }
  0x72   :  { %1620 = vmatmul.mubr.msk.bf16.gmra.mrb[40].mxu0 %vm26_vm0, %v1712_v50 }
  0x73   :  { %1623 = vmatprep.mubr.msk.bf16.mxu0 %vm26_vm0, %v1713_v51 }
  0x7a   :  { %1624 = vmatmul.mubr.msk.bf16.gmra.mrb[44].mxu0 %vm26_vm0, %v1714_v52 }
  0xf5   :  { %v1509_v55 = vpop.f32.mrb[0].mxu0 }
  0xf6   :  { %v543_v57 = vadd.f32 %v1509_v55, %v61_v53  ;;  %v285_v58 = vpop.f32.mrb[1].mxu0 }
  0xf7   :  { %v541_v60 = vadd.f32 %v285_v58, %v59_v54  ;;  %v1510_v61 = vpop.f32.mrb[2].mxu0  ;;  %v1541_v7 = vpop.f32.mrb[0].mxu1  ;;  %v73_v58 = vld [vmem:[#allocation2 + $0x70] sm:$0xff] }
  0xf8   :  { %576 = vst.msk [vmem:[#allocation2 + $0x10] sm:$0xff] %vm26_vm0, %v543_v57  ;;  %v544_v62 = vadd.f32 %v1510_v61, %v62_v56  ;;  %v288_v63 = vpop.f32.mrb[3].mxu0  ;;  %v559_v12 = vadd.f32 %v1541_v7, %v77_v2  ;;  %v478_v13 = vpop.f32.mrb[1].mxu1  ;;  %v85_v61 = vld [vmem:[#allocation2 + $0xd0] sm:$0xff]  ;;  %v74_v2 = vld [vmem:[#allocation2 + $0x78] sm:$0xff]  ;;  %v72_v7 = vld [vmem:[#allocation2 + $0x68] sm:$0xff] }
  0xf9   :  { %574 = vst.msk [vmem:[#allocation2] sm:$0xff] %vm26_vm0, %v541_v60  ;;  %v542_v0 = vadd.f32 %v288_v63, %v60_v59  ;;  %v557_v17 = vadd.f32 %v478_v13, %v75_v4  ;;  %v1542_v18 = vpop.f32.mrb[2].mxu1  ;;  %v86_v4 = vld [vmem:[#allocation2 + $0xd8] sm:$0xff] }
  0xfa   :  { %577 = vst.msk [vmem:[#allocation2 + $0x18] sm:$0xff] %vm26_vm0, %v544_v62  ;;  %592 = vst.msk [vmem:[#allocation2 + $0x90] sm:$0xff] %vm26_vm0, %v559_v12  ;;  %v560_v21 = vadd.f32 %v1542_v18, %v78_v8  ;;  %v481_v22 = vpop.f32.mrb[3].mxu1  ;;  %v71_v62 = vld [vmem:[#allocation2 + $0x60] sm:$0xff] }
  0xfb   :  { %575 = vst.msk [vmem:[#allocation2 + $0x8] sm:$0xff] %vm26_vm0, %v542_v0  ;;  %590 = vst.msk [vmem:[#allocation2 + $0x80] sm:$0xff] %vm26_vm0, %v557_v17  ;;  %v558_v25 = vadd.f32 %v481_v22, %v76_v14  ;;  %v83_v0 = vld [vmem:[#allocation2 + $0xc0] sm:$0xff] }
  0xfc   :  { %593 = vst.msk [vmem:[#allocation2 + $0x98] sm:$0xff] %vm26_vm0, %v560_v21 }
  0xfd   :  { %v1513_v5 = vpop.f32.mrb[4].mxu0  ;;  %591 = vst.msk [vmem:[#allocation2 + $0x88] sm:$0xff] %vm26_vm0, %v558_v25 }
  0xfe   :  { %v547_v9 = vadd.f32 %v1513_v5, %v65_v1  ;;  %v301_v10 = vpop.f32.mrb[5].mxu0 }
  0xff   :  { %v545_v15 = vadd.f32 %v301_v10, %v63_v3  ;;  %v1514_v16 = vpop.f32.mrb[6].mxu0  ;;  %v643_v30 = vld [vmem:[#allocation2 + $0x10] sm:$0xff]  ;;  %v1545_v37 = vpop.f32.mrb[4].mxu1  ;;  %v84_v10 = vld [vmem:[#allocation2 + $0xc8] sm:$0xff] }
 0x100   :  { %580 = vst.msk [vmem:[#allocation2 + $0x30] sm:$0xff] %vm26_vm0, %v547_v9  ;;  %v548_v19 = vadd.f32 %v1514_v16, %v66_v6  ;;  %v304_v20 = vpop.f32.mrb[7].mxu0  ;;  %v641_v26 = vld [vmem:[#allocation2] sm:$0xff]  ;;  %v563_v42 = vadd.f32 %v1545_v37, %v81_v31  ;;  %v494_v43 = vpop.f32.mrb[5].mxu1 }
 0x101   :  { %578 = vst.msk [vmem:[#allocation2 + $0x20] sm:$0xff] %vm26_vm0, %v545_v15  ;;  %v546_v23 = vadd.f32 %v304_v20, %v64_v11  ;;  %v644_v24 = vld [vmem:[#allocation2 + $0x18] sm:$0xff]  ;;  %v561_v47 = vadd.f32 %v494_v43, %v79_v34  ;;  %v1546_v48 = vpop.f32.mrb[6].mxu1 }
 0x102   :  { %581 = vst.msk [vmem:[#allocation2 + $0x38] sm:$0xff] %vm26_vm0, %v548_v19  ;;  %v642_v27 = vld [vmem:[#allocation2 + $0x8] sm:$0xff]  ;;  %v674_v33 = vpack.c.bf16 %v644_v24, %v643_v30  ;;  %596 = vst.msk [vmem:[#allocation2 + $0xb0] sm:$0xff] %vm26_vm0, %v563_v42  ;;  %v564_v51 = vadd.f32 %v1546_v48, %v82_v38  ;;  %v497_v52 = vpop.f32.mrb[7].mxu1  ;;  %v90_v30 = vld [vmem:[#allocation2 + $0xf8] sm:$0xff] }
 0x103   :  { %579 = vst.msk [vmem:[#allocation2 + $0x28] sm:$0xff] %vm26_vm0, %v546_v23  ;;  %v673_v29 = vpack.c.bf16 %v642_v27, %v641_v26  ;;  %594 = vst.msk [vmem:[#allocation2 + $0xa0] sm:$0xff] %vm26_vm0, %v561_v47  ;;  %v562_v55 = vadd.f32 %v497_v52, %v80_v44  ;;  %v89_v26 = vld [vmem:[#allocation2 + $0xf0] sm:$0xff] }
 0x104   :  { %597 = vst.msk [vmem:[#allocation2 + $0xb8] sm:$0xff] %vm26_vm0, %v564_v51  ;;  %v658_v37 = vld [vmem:[#allocation2 + $0x88] sm:$0xff]  ;;  %v660_v51 = vld [vmem:[#allocation2 + $0x98] sm:$0xff] }
 0x105   :  { %v1517_v35 = vpop.f32.mrb[8].mxu0  ;;  %1559 = vmatprep.mubr.msk.bf16.mxu1 %vm26_vm0, %v673_v29  ;;  %595 = vst.msk [vmem:[#allocation2 + $0xa8] sm:$0xff] %vm26_vm0, %v562_v55 }
 0x106   :  { %v551_v39 = vadd.f32 %v1517_v35, %v69_v28  ;;  %v317_v40 = vpop.f32.mrb[9].mxu0  ;;  %1560 = vmatmul.mubr.msk.bf16.vlgmr.msra.gmra.mrb[16].mxu1 %vm26_vm0, %v674_v33  ;;  %v87_v28 = vld [vmem:[#allocation2 + $0xe0] sm:$0xff]  ;;  %v88_v33 = vld [vmem:[#allocation2 + $0xe8] sm:$0xff] }
 0x107   :  { %v549_v45 = vadd.f32 %v317_v40, %v67_v32  ;;  %v1518_v46 = vpop.f32.mrb[10].mxu0  ;;  %v647_v60 = vld [vmem:[#allocation2 + $0x30] sm:$0xff]  ;;  %v1549_v3 = vpop.f32.mrb[8].mxu1 }
 0x108   :  { %584 = vst.msk [vmem:[#allocation2 + $0x50] sm:$0xff] %vm26_vm0, %v551_v39  ;;  %v552_v49 = vadd.f32 %v1518_v46, %v70_v36  ;;  %v320_v50 = vpop.f32.mrb[11].mxu0  ;;  %v645_v56 = vld [vmem:[#allocation2 + $0x20] sm:$0xff]  ;;  %v567_v8 = vadd.f32 %v1549_v3, %v85_v61  ;;  %v510_v9 = vpop.f32.mrb[9].mxu1 }
 0x109   :  { %582 = vst.msk [vmem:[#allocation2 + $0x40] sm:$0xff] %vm26_vm0, %v549_v45  ;;  %v550_v53 = vadd.f32 %v320_v50, %v68_v41  ;;  %v648_v54 = vld [vmem:[#allocation2 + $0x38] sm:$0xff]  ;;  %v565_v13 = vadd.f32 %v510_v9, %v83_v0  ;;  %v1550_v14 = vpop.f32.mrb[10].mxu1  ;;  %v657_v36 = vld [vmem:[#allocation2 + $0x80] sm:$0xff]  ;;  %v659_v50 = vld [vmem:[#allocation2 + $0x90] sm:$0xff] }
 0x10a   :  { %585 = vst.msk [vmem:[#allocation2 + $0x58] sm:$0xff] %vm26_vm0, %v552_v49  ;;  %v646_v57 = vld [vmem:[#allocation2 + $0x28] sm:$0xff]  ;;  %v676_v63 = vpack.c.bf16 %v648_v54, %v647_v60  ;;  %600 = vst.msk [vmem:[#allocation2 + $0xd0] sm:$0xff] %vm26_vm0, %v567_v8  ;;  %v568_v17 = vadd.f32 %v1550_v14, %v86_v4  ;;  %v513_v18 = vpop.f32.mrb[11].mxu1  ;;  %v681_v46 = vpack.c.bf16 %v658_v37, %v657_v36  ;;  %v661_v48 = vld [vmem:[#allocation2 + $0xa0] sm:$0xff] }
 0x10b   :  { %583 = vst.msk [vmem:[#allocation2 + $0x48] sm:$0xff] %vm26_vm0, %v550_v53  ;;  %v675_v59 = vpack.c.bf16 %v646_v57, %v645_v56  ;;  %598 = vst.msk [vmem:[#allocation2 + $0xc0] sm:$0xff] %vm26_vm0, %v565_v13  ;;  %v566_v21 = vadd.f32 %v513_v18, %v84_v10  ;;  %v682_v53 = vpack.c.bf16 %v660_v51, %v659_v50  ;;  %v663_v56 = vld [vmem:[#allocation2 + $0xb0] sm:$0xff]  ;;  %v664_v57 = vld [vmem:[#allocation2 + $0xb8] sm:$0xff] }
 0x10c   :  { %601 = vst.msk [vmem:[#allocation2 + $0xd8] sm:$0xff] %vm26_vm0, %v568_v17  ;;  %v662_v49 = vld [vmem:[#allocation2 + $0xa8] sm:$0xff] }
 0x10d   :  { %v1521_v1 = vpop.f32.mrb[12].mxu0  ;;  %1563 = vmatprep.mubr.msk.bf16.mxu1 %vm26_vm0, %v675_v59  ;;  %599 = vst.msk [vmem:[#allocation2 + $0xc8] sm:$0xff] %vm26_vm0, %v566_v21  ;;  %v683_v52 = vpack.c.bf16 %v662_v49, %v661_v48  ;;  %v684_v59 = vpack.c.bf16 %v664_v57, %v663_v56 }
 0x10e   :  { %v555_v5 = vadd.f32 %v1521_v1, %v73_v58  ;;  %v333_v6 = vpop.f32.mrb[13].mxu0  ;;  %1564 = vmatmul.mubr.msk.bf16.gmra.mrb[20].mxu1 %vm26_vm0, %v676_v63 }
 0x10f   :  { %v553_v11 = vadd.f32 %v333_v6, %v71_v62  ;;  %v1522_v12 = vpop.f32.mrb[14].mxu0  ;;  %v651_v25 = vld [vmem:[#allocation2 + $0x50] sm:$0xff]  ;;  %v1553_v29 = vpop.f32.mrb[12].mxu1 }
 0x110   :  { %588 = vst.msk [vmem:[#allocation2 + $0x70] sm:$0xff] %vm26_vm0, %v555_v5  ;;  %v556_v15 = vadd.f32 %v1522_v12, %v74_v2  ;;  %v336_v16 = vpop.f32.mrb[15].mxu0  ;;  %v649_v22 = vld [vmem:[#allocation2 + $0x40] sm:$0xff]  ;;  %v571_v31 = vadd.f32 %v1553_v29, %v89_v26  ;;  %v526_v32 = vpop.f32.mrb[13].mxu1 }
 0x111   :  { %586 = vst.msk [vmem:[#allocation2 + $0x60] sm:$0xff] %vm26_vm0, %v553_v11  ;;  %v554_v19 = vadd.f32 %v336_v16, %v72_v7  ;;  %v652_v20 = vld [vmem:[#allocation2 + $0x58] sm:$0xff]  ;;  %v569_v34 = vadd.f32 %v526_v32, %v87_v28  ;;  %v1554_v35 = vpop.f32.mrb[14].mxu1  ;;  %v667_v62 = vld [vmem:[#allocation2 + $0xd0] sm:$0xff] }
 0x112   :  { %589 = vst.msk [vmem:[#allocation2 + $0x78] sm:$0xff] %vm26_vm0, %v556_v15  ;;  %v650_v23 = vld [vmem:[#allocation2 + $0x48] sm:$0xff]  ;;  %v678_v27 = vpack.c.bf16 %v652_v20, %v651_v25  ;;  %604 = vst.msk [vmem:[#allocation2 + $0xf0] sm:$0xff] %vm26_vm0, %v571_v31  ;;  %v572_v38 = vadd.f32 %v1554_v35, %v90_v30  ;;  %v529_v39 = vpop.f32.mrb[15].mxu1  ;;  %v665_v54 = vld [vmem:[#allocation2 + $0xc0] sm:$0xff] }
 0x113   :  { %587 = vst.msk [vmem:[#allocation2 + $0x68] sm:$0xff] %vm26_vm0, %v554_v19  ;;  %v677_v24 = vpack.c.bf16 %v650_v23, %v649_v22  ;;  %602 = vst.msk [vmem:[#allocation2 + $0xe0] sm:$0xff] %vm26_vm0, %v569_v34  ;;  %v570_v41 = vadd.f32 %v529_v39, %v88_v33  ;;  %v668_v63 = vld [vmem:[#allocation2 + $0xd8] sm:$0xff] }
 0x114   :  { %605 = vst.msk [vmem:[#allocation2 + $0xf8] sm:$0xff] %vm26_vm0, %v572_v38  ;;  %v666_v55 = vld [vmem:[#allocation2 + $0xc8] sm:$0xff]  ;;  %v686_v1 = vpack.c.bf16 %v668_v63, %v667_v62  ;;  %v2076_v38 = vld [vmem:[%s2150_s4] ss:$0 sm:$0xff]  ;;  %s1740_s4 = smov [#allocation3]  }
 0x115   :  { %1567 = vmatprep.mubr.msk.bf16.mxu1 %vm26_vm0, %v677_v24  ;;  %603 = vst.msk [vmem:[#allocation2 + $0xe8] sm:$0xff] %vm26_vm0, %v570_v41  ;;  %v685_v58 = vpack.c.bf16 %v666_v55, %v665_v54  ;;  %v1597_v5 = vpop.f32.mrb[16].mxu0  ;;  %s1327_s17 = sshll.u32 %s1740_s4, 4  ;;  %s1328_s17 = int_to_ptr.vmem [resolvable:$true] %s1327_s17 }
 0x116   :  { %1568 = vmatmul.mubr.msk.bf16.gmra.mrb[24].mxu1 %vm26_vm0, %v678_v27  ;;  %v1092_v6 = vpop.f32.mrb[17].mxu0  ;;  %s1715_s3 = scalar_lea.vmem %s1328_s17, 4096  ;;  %p1720_p1 = scmp.lt.s32.totalorder %s1328_s17, %s1328_s17 }
 0x117   :  { %v655_v45 = vld [vmem:[#allocation2 + $0x70] sm:$0xff]  ;;  %v1598_v7 = vpop.f32.mrb[18].mxu0  ;;  %p1716_p0 = scmp.ne.s32.totalorder %s1328_s17, %s1715_s3  ;;  %p1721_p2 = scmp.lt.s32.totalorder %s1715_s3, %s1715_s3 }
 0x118   :  { %v653_v42 = vld [vmem:[#allocation2 + $0x60] sm:$0xff]  ;;  %v1095_v8 = vpop.f32.mrb[19].mxu0 }
 0x119   :  { %v656_v40 = vld [vmem:[#allocation2 + $0x78] sm:$0xff]  ;;  %v671_v2 = vld [vmem:[#allocation2 + $0xf0] sm:$0xff]  ;;  %p1722_p3 = por %p1721_p2, %p1720_p1 }
 0x11a   :  { %v654_v43 = vld [vmem:[#allocation2 + $0x68] sm:$0xff]  ;;  %v680_v47 = vpack.c.bf16 %v656_v40, %v655_v45  ;;  %v669_v60 = vld [vmem:[#allocation2 + $0xe0] sm:$0xff] }
 0x11b   :  { %v679_v44 = vpack.c.bf16 %v654_v43, %v653_v42  ;;  %v672_v3 = vld [vmem:[#allocation2 + $0xf8] sm:$0xff]  ;;  %p1723_p4 = pnand %p1722_p3, %p1716_p0 }
 0x11c   :  { %v670_v61 = vld [vmem:[#allocation2 + $0xe8] sm:$0xff]  ;;  %v688_v4 = vpack.c.bf16 %v672_v3, %v671_v2 }
 0x11d   :  { %1571 = vmatprep.mubr.msk.bf16.mxu1 %vm26_vm0, %v679_v44  ;;  %v687_v0 = vpack.c.bf16 %v670_v61, %v669_v60  ;;  %v1601_v9 = vpop.f32.mrb[20].mxu0 }
 0x11e   :  { %1572 = vmatmul.mubr.msk.bf16.gmra.mrb[28].mxu1 %vm26_vm0, %v680_v47  ;;  %v1108_v10 = vpop.f32.mrb[21].mxu0 }
 0x11f   :  { %1575 = vmatprep.mubr.msk.bf16.mxu1 %vm26_vm0, %v681_v46  ;;  %v1602_v11 = vpop.f32.mrb[22].mxu0 }
 0x120   :  { %v1111_v12 = vpop.f32.mrb[23].mxu0 }
 0x125   :  { %v2025_v13 = vpop.f32.mrb[24].mxu0 }
 0x126   :  { %1576 = vmatmul.mubr.msk.bf16.gmra.mrb[32].mxu1 %vm26_vm0, %v682_v53  ;;  %v2027_v14 = vpop.f32.mrb[25].mxu0 }
 0x127   :  { %1579 = vmatprep.mubr.msk.bf16.mxu1 %vm26_vm0, %v683_v52  ;;  %v2029_v15 = vpop.f32.mrb[26].mxu0 }
 0x128   :  { %v2031_v16 = vpop.f32.mrb[27].mxu0 }
 0x12d   :  { %v2033_v17 = vpop.f32.mrb[28].mxu0 }
 0x12e   :  { %1580 = vmatmul.mubr.msk.bf16.gmra.mrb[36].mxu1 %vm26_vm0, %v684_v59  ;;  %v2035_v18 = vpop.f32.mrb[29].mxu0 }
 0x12f   :  { %1583 = vmatprep.mubr.msk.bf16.mxu1 %vm26_vm0, %v685_v58  ;;  %v2037_v19 = vpop.f32.mrb[30].mxu0 }
 0x130   :  { %v2039_v20 = vpop.f32.mrb[31].mxu0 }
 0x135   :  { %v2041_v21 = vpop.f32.mrb[32].mxu0 }
 0x136   :  { %1584 = vmatmul.mubr.msk.bf16.gmra.mrb[40].mxu1 %vm26_vm0, %v686_v1  ;;  %v2043_v22 = vpop.f32.mrb[33].mxu0 }
 0x137   :  { %1587 = vmatprep.mubr.msk.bf16.mxu1 %vm26_vm0, %v687_v0  ;;  %v2045_v23 = vpop.f32.mrb[34].mxu0 }
 0x138   :  { %v2047_v24 = vpop.f32.mrb[35].mxu0 }
 0x13d   :  { %v2049_v25 = vpop.f32.mrb[36].mxu0 }
 0x13e   :  { %1588 = vmatmul.mubr.msk.bf16.gmra.mrb[44].mxu1 %vm26_vm0, %v688_v4  ;;  %v2051_v26 = vpop.f32.mrb[37].mxu0 }
 0x13f   :  { %v2053_v27 = vpop.f32.mrb[38].mxu0 }
 0x140   :  { %v2055_v28 = vpop.f32.mrb[39].mxu0 }
 0x145   :  { %v2057_v29 = vpop.f32.mrb[40].mxu0 }
 0x146   :  { %v2059_v30 = vpop.f32.mrb[41].mxu0 }
 0x147   :  { %v2061_v31 = vpop.f32.mrb[42].mxu0 }
 0x148   :  { %v2063_v32 = vpop.f32.mrb[43].mxu0 }
 0x14d   :  { %v2065_v33 = vpop.f32.mrb[44].mxu0 }
 0x14e   :  { %v2067_v34 = vpop.f32.mrb[45].mxu0 }
 0x14f   :  { %v2069_v35 = vpop.f32.mrb[46].mxu0 }
 0x150   :  { %v2071_v36 = vpop.f32.mrb[47].mxu0 }
 0x1d9   :  { %v1561_v37 = vpop.f32.mrb[16].mxu1 }
 0x1da   :  { %v1101_v39 = vadd.f32 %v1597_v5, %v1561_v37  ;;  %v791_v40 = vpop.f32.mrb[17].mxu1 }
 0x1db   :  { %v1093_v41 = vadd.f32 %v1092_v6, %v791_v40  ;;  %v1562_v42 = vpop.f32.mrb[18].mxu1 }
 0x1dc   :  { %v1228_v43 = vadd.f32 %v2076_v38, %v1101_v39  ;;  %v1104_v44 = vadd.f32 %v1598_v7, %v1562_v42  ;;  %v794_v45 = vpop.f32.mrb[19].mxu1 }
 0x1dd   :  { %v1226_v46 = vadd.f32 %v2076_v38, %v1093_v41  ;;  %v1096_v47 = vadd.f32 %v1095_v8, %v794_v45 }
 0x1de   :  { %v1260_v48 = vmax.f32 %v1228_v43, 0.0  ;;  %v1229_v49 = vadd.f32 %v2076_v38, %v1104_v44 }
 0x1df   :  { %v1258_v50 = vmax.f32 %v1226_v46, 0.0  ;;  %v1227_v51 = vadd.f32 %v2076_v38, %v1096_v47 }
 0x1e0   :  { %1292 = vst [vmem:[#allocation3 + $0x10] sm:$0xff] %v1260_v48  ;;  %v1261_v52 = vmax.f32 %v1229_v49, 0.0 }
 0x1e1   :  { %1290 = vst [vmem:[#allocation3] sm:$0xff] %v1258_v50  ;;  %v1259_v53 = vmax.f32 %v1227_v51, 0.0  ;;  %v1565_v54 = vpop.f32.mrb[20].mxu1 }
 0x1e2   :  { %1293 = vst [vmem:[#allocation3 + $0x18] sm:$0xff] %v1261_v52  ;;  %v1117_v55 = vadd.f32 %v1601_v9, %v1565_v54  ;;  %v807_v56 = vpop.f32.mrb[21].mxu1 }
 0x1e3   :  { %1291 = vst [vmem:[#allocation3 + $0x8] sm:$0xff] %v1259_v53  ;;  %v1109_v57 = vadd.f32 %v1108_v10, %v807_v56  ;;  %v1566_v58 = vpop.f32.mrb[22].mxu1 }
 0x1e4   :  { %v1232_v59 = vadd.f32 %v2076_v38, %v1117_v55  ;;  %v1120_v60 = vadd.f32 %v1602_v11, %v1566_v58  ;;  %v810_v61 = vpop.f32.mrb[23].mxu1 }
 0x1e5   :  { %v1230_v62 = vadd.f32 %v2076_v38, %v1109_v57  ;;  %v1112_v63 = vadd.f32 %v1111_v12, %v810_v61 }
 0x1e6   :  { %v1264_v0 = vmax.f32 %v1232_v59, 0.0  ;;  %v1233_v1 = vadd.f32 %v2076_v38, %v1120_v60 }
 0x1e7   :  { %v1262_v2 = vmax.f32 %v1230_v62, 0.0  ;;  %v1231_v3 = vadd.f32 %v2076_v38, %v1112_v63 }
 0x1e8   :  { %1296 = vst [vmem:[#allocation3 + $0x30] sm:$0xff] %v1264_v0  ;;  %v1265_v4 = vmax.f32 %v1233_v1, 0.0 }
 0x1e9   :  { %1294 = vst [vmem:[#allocation3 + $0x20] sm:$0xff] %v1262_v2  ;;  %v1263_v5 = vmax.f32 %v1231_v3, 0.0  ;;  %v1569_v6 = vpop.f32.mrb[24].mxu1 }
 0x1ea   :  { %1297 = vst [vmem:[#allocation3 + $0x38] sm:$0xff] %v1265_v4  ;;  %v1133_v7 = vadd.f32 %v2025_v13, %v1569_v6  ;;  %v823_v8 = vpop.f32.mrb[25].mxu1 }
 0x1eb   :  { %1295 = vst [vmem:[#allocation3 + $0x28] sm:$0xff] %v1263_v5  ;;  %v1125_v9 = vadd.f32 %v2027_v14, %v823_v8  ;;  %v1570_v10 = vpop.f32.mrb[26].mxu1 }
 0x1ec   :  { %v1236_v11 = vadd.f32 %v2076_v38, %v1133_v7  ;;  %v1136_v12 = vadd.f32 %v2029_v15, %v1570_v10  ;;  %v826_v37 = vpop.f32.mrb[27].mxu1 }
 0x1ed   :  { %v1234_v39 = vadd.f32 %v2076_v38, %v1125_v9  ;;  %v1128_v40 = vadd.f32 %v2031_v16, %v826_v37 }
 0x1ee   :  { %v1268_v41 = vmax.f32 %v1236_v11, 0.0  ;;  %v1237_v42 = vadd.f32 %v2076_v38, %v1136_v12 }
 0x1ef   :  { %v1266_v43 = vmax.f32 %v1234_v39, 0.0  ;;  %v1235_v13 = vadd.f32 %v2076_v38, %v1128_v40 }
 0x1f0   :  { %1300 = vst [vmem:[#allocation3 + $0x50] sm:$0xff] %v1268_v41  ;;  %v1269_v44 = vmax.f32 %v1237_v42, 0.0 }
 0x1f1   :  { %1298 = vst [vmem:[#allocation3 + $0x40] sm:$0xff] %v1266_v43  ;;  %v1267_v14 = vmax.f32 %v1235_v13, 0.0  ;;  %v1573_v45 = vpop.f32.mrb[28].mxu1 }
 0x1f2   :  { %1301 = vst [vmem:[#allocation3 + $0x58] sm:$0xff] %v1269_v44  ;;  %v1149_v46 = vadd.f32 %v2033_v17, %v1573_v45  ;;  %v839_v15 = vpop.f32.mrb[29].mxu1 }
 0x1f3   :  { %1299 = vst [vmem:[#allocation3 + $0x48] sm:$0xff] %v1267_v14  ;;  %v1141_v47 = vadd.f32 %v2035_v18, %v839_v15  ;;  %v1574_v48 = vpop.f32.mrb[30].mxu1 }
 0x1f4   :  { %v1240_v16 = vadd.f32 %v2076_v38, %v1149_v46  ;;  %v1152_v49 = vadd.f32 %v2037_v19, %v1574_v48  ;;  %v842_v50 = vpop.f32.mrb[31].mxu1 }
 0x1f5   :  { %v1238_v51 = vadd.f32 %v2076_v38, %v1141_v47  ;;  %v1144_v52 = vadd.f32 %v2039_v20, %v842_v50 }
 0x1f6   :  { %v1272_v53 = vmax.f32 %v1240_v16, 0.0  ;;  %v1241_v54 = vadd.f32 %v2076_v38, %v1152_v49 }
 0x1f7   :  { %v1270_v55 = vmax.f32 %v1238_v51, 0.0  ;;  %v1239_v17 = vadd.f32 %v2076_v38, %v1144_v52 }
 0x1f8   :  { %1304 = vst [vmem:[#allocation3 + $0x70] sm:$0xff] %v1272_v53  ;;  %v1273_v56 = vmax.f32 %v1241_v54, 0.0 }
 0x1f9   :  { %1302 = vst [vmem:[#allocation3 + $0x60] sm:$0xff] %v1270_v55  ;;  %v1271_v18 = vmax.f32 %v1239_v17, 0.0  ;;  %v1577_v57 = vpop.f32.mrb[32].mxu1 }
 0x1fa   :  { %1305 = vst [vmem:[#allocation3 + $0x78] sm:$0xff] %v1273_v56  ;;  %v1165_v58 = vadd.f32 %v2041_v21, %v1577_v57  ;;  %v855_v19 = vpop.f32.mrb[33].mxu1 }
 0x1fb   :  { %1303 = vst [vmem:[#allocation3 + $0x68] sm:$0xff] %v1271_v18  ;;  %v1157_v59 = vadd.f32 %v2043_v22, %v855_v19  ;;  %v1578_v60 = vpop.f32.mrb[34].mxu1 }
 0x1fc   :  { %v1244_v20 = vadd.f32 %v2076_v38, %v1165_v58  ;;  %v1168_v61 = vadd.f32 %v2045_v23, %v1578_v60  ;;  %v858_v62 = vpop.f32.mrb[35].mxu1 }
 0x1fd   :  { %v1242_v63 = vadd.f32 %v2076_v38, %v1157_v59  ;;  %v1160_v0 = vadd.f32 %v2047_v24, %v858_v62 }
 0x1fe   :  { %v1276_v1 = vmax.f32 %v1244_v20, 0.0  ;;  %v1245_v2 = vadd.f32 %v2076_v38, %v1168_v61 }
 0x1ff   :  { %v1274_v3 = vmax.f32 %v1242_v63, 0.0  ;;  %v1243_v21 = vadd.f32 %v2076_v38, %v1160_v0 }
 0x200   :  { %1308 = vst [vmem:[#allocation3 + $0x90] sm:$0xff] %v1276_v1  ;;  %v1277_v4 = vmax.f32 %v1245_v2, 0.0 }
 0x201   :  { %1306 = vst [vmem:[#allocation3 + $0x80] sm:$0xff] %v1274_v3  ;;  %v1275_v22 = vmax.f32 %v1243_v21, 0.0  ;;  %v1581_v5 = vpop.f32.mrb[36].mxu1 }
 0x202   :  { %1309 = vst [vmem:[#allocation3 + $0x98] sm:$0xff] %v1277_v4  ;;  %v1181_v6 = vadd.f32 %v2049_v25, %v1581_v5  ;;  %v871_v23 = vpop.f32.mrb[37].mxu1 }
 0x203   :  { %1307 = vst [vmem:[#allocation3 + $0x88] sm:$0xff] %v1275_v22  ;;  %v1173_v7 = vadd.f32 %v2051_v26, %v871_v23  ;;  %v1582_v8 = vpop.f32.mrb[38].mxu1 }
 0x204   :  { %v1248_v24 = vadd.f32 %v2076_v38, %v1181_v6  ;;  %v1184_v9 = vadd.f32 %v2053_v27, %v1582_v8  ;;  %v874_v10 = vpop.f32.mrb[39].mxu1 }
 0x205   :  { %v1246_v11 = vadd.f32 %v2076_v38, %v1173_v7  ;;  %v1176_v12 = vadd.f32 %v2055_v28, %v874_v10 }
 0x206   :  { %v1280_v37 = vmax.f32 %v1248_v24, 0.0  ;;  %v1249_v39 = vadd.f32 %v2076_v38, %v1184_v9 }
 0x207   :  { %v1278_v40 = vmax.f32 %v1246_v11, 0.0  ;;  %v1247_v25 = vadd.f32 %v2076_v38, %v1176_v12 }
 0x208   :  { %1312 = vst [vmem:[#allocation3 + $0xb0] sm:$0xff] %v1280_v37  ;;  %v1281_v41 = vmax.f32 %v1249_v39, 0.0 }
 0x209   :  { %1310 = vst [vmem:[#allocation3 + $0xa0] sm:$0xff] %v1278_v40  ;;  %v1279_v26 = vmax.f32 %v1247_v25, 0.0  ;;  %v1585_v42 = vpop.f32.mrb[40].mxu1 }
 0x20a   :  { %1313 = vst [vmem:[#allocation3 + $0xb8] sm:$0xff] %v1281_v41  ;;  %v1197_v43 = vadd.f32 %v2057_v29, %v1585_v42  ;;  %v887_v27 = vpop.f32.mrb[41].mxu1 }
 0x20b   :  { %1311 = vst [vmem:[#allocation3 + $0xa8] sm:$0xff] %v1279_v26  ;;  %v1189_v13 = vadd.f32 %v2059_v30, %v887_v27  ;;  %v1586_v44 = vpop.f32.mrb[42].mxu1 }
 0x20c   :  { %v1252_v28 = vadd.f32 %v2076_v38, %v1197_v43  ;;  %v1200_v14 = vadd.f32 %v2061_v31, %v1586_v44  ;;  %v890_v45 = vpop.f32.mrb[43].mxu1 }
 0x20d   :  { %v1250_v46 = vadd.f32 %v2076_v38, %v1189_v13  ;;  %v1192_v15 = vadd.f32 %v2063_v32, %v890_v45 }
 0x20e   :  { %v1284_v47 = vmax.f32 %v1252_v28, 0.0  ;;  %v1253_v48 = vadd.f32 %v2076_v38, %v1200_v14 }
 0x20f   :  { %v1282_v16 = vmax.f32 %v1250_v46, 0.0  ;;  %v1251_v29 = vadd.f32 %v2076_v38, %v1192_v15 }
 0x210   :  { %1316 = vst [vmem:[#allocation3 + $0xd0] sm:$0xff] %v1284_v47  ;;  %v1285_v49 = vmax.f32 %v1253_v48, 0.0 }
 0x211   :  { %1314 = vst [vmem:[#allocation3 + $0xc0] sm:$0xff] %v1282_v16  ;;  %v1283_v30 = vmax.f32 %v1251_v29, 0.0  ;;  %v1589_v50 = vpop.f32.mrb[44].mxu1 }
 0x212   :  { %1317 = vst [vmem:[#allocation3 + $0xd8] sm:$0xff] %v1285_v49  ;;  %v1213_v51 = vadd.f32 %v2065_v33, %v1589_v50  ;;  %v903_v31 = vpop.f32.mrb[45].mxu1 }
 0x213   :  { %1315 = vst [vmem:[#allocation3 + $0xc8] sm:$0xff] %v1283_v30  ;;  %v1205_v52 = vadd.f32 %v2067_v34, %v903_v31  ;;  %v1590_v53 = vpop.f32.mrb[46].mxu1 }
 0x214   :  { %v1256_v32 = vadd.f32 %v2076_v38, %v1213_v51  ;;  %v1216_v54 = vadd.f32 %v2069_v35, %v1590_v53  ;;  %v906_v55 = vpop.f32.mrb[47].mxu1 }
 0x215   :  { %v1254_v17 = vadd.f32 %v2076_v38, %v1205_v52  ;;  %v1208_v56 = vadd.f32 %v2071_v36, %v906_v55 }
 0x216   :  { %v1288_v18 = vmax.f32 %v1256_v32, 0.0  ;;  %v1257_v57 = vadd.f32 %v2076_v38, %v1216_v54 }
 0x217   :  { %v1286_v33 = vmax.f32 %v1254_v17, 0.0  ;;  %v1255_v58 = vadd.f32 %v2076_v38, %v1208_v56 }
 0x218   :  { %1320 = vst [vmem:[#allocation3 + $0xf0] sm:$0xff] %v1288_v18  ;;  %v1289_v34 = vmax.f32 %v1257_v57, 0.0 }
 0x219   :  { %1318 = vst [vmem:[#allocation3 + $0xe0] sm:$0xff] %v1286_v33  ;;  %v1287_v19 = vmax.f32 %v1255_v58, 0.0 }
 0x21a   :  { %1321 = vst [vmem:[#allocation3 + $0xf8] sm:$0xff] %v1289_v34 }
 0x21b   :  { %1319 = vst [vmem:[#allocation3 + $0xe8] sm:$0xff] %v1287_v19 }
 0x21c   :  { %1726 = shalt.err (!%p1723_p4)
}
 0x21d   :  { %s1727_s20 = scalar_lea.hbm %s2151_s5, 4096 }
 0x21e   :  { %p1728_p5 = scmp.ne.s32.totalorder %s2151_s5, %s1727_s20  ;;  %p1731_p6 = scmp.lt.u32.totalorder %s1727_s20, %s2151_s5 }
 0x220   :  { %p1733_p7 = pnand %p1731_p6, %p1728_p5 }
 0x222   :  { %1736 = shalt.err (!%p1733_p7)
}
 0x223   :  { %s1741_s25 = smov 128   ;;  %s1742_s26 = smov 8  }
 0x224   :  { %1333 = dma.vmem_to_hbm [thread:$0]  %s1328_s17, 4096, %s2151_s5, [#allocation4], %s1741_s25, %s1741_s25, %s1742_s26  }
 0x225   :  { %1737 = dma.done.wait [#allocation4], 4096  }
 0x226   :  { %1738 = vsyncadd [#allocation4], 4294963200 }
 0x227   :  { %1337 = vsyncpa [#allocation4], 1 }

</bundles_post_ra>
